<compile_context>
chip_gen: v7x
topology: tpu7x:2x2x1
jax: 0.10.0
libtpu: 0.0.40
codegen_flags: <defaults>
</compile_context>

<pallas_src>
import functools

import jax
import jax.numpy as jnp
import numpy as np
from jax.experimental import pallas as pl
from jax.experimental.pallas import tpu as pltpu


def _mha_kernel(*args, heads, compute_dtype, has_mask):
    if has_mask:
        (q_ref, k_ref, v_ref, mb_ref,
         wfc_ref, bfc_ref, o_ref, m_sc, l_sc, acc_sc) = args
    else:
        (q_ref, k_ref, v_ref,
         wfc_ref, bfc_ref, o_ref, m_sc, l_sc, acc_sc) = args
        mb_ref = None

    ki = pl.program_id(2)

    # ---- init online-softmax state once per (batch, q-tile)
    @pl.when(ki == 0)
    def _():
        m_sc[...] = jnp.full_like(m_sc, -jnp.inf)
        l_sc[...] = jnp.zeros_like(l_sc)
        acc_sc[...] = jnp.zeros_like(acc_sc)

    # Mask bias loaded/cast ONCE per k step (hoisted out of the head loop).
    if has_mask:
        mbias = mb_ref[...].astype(jnp.float32)          # (tq, tk): 0 keep, ~-1e20 drop

    # Static unroll over heads; per-head flash state indexed by leading axis h.
    for h in range(heads):
        qh = q_ref[h]                                    # (tq, d), pre-scaled by 1/sqrt(E)
        kh = k_ref[h]                                    # (tk, d)
        vh = v_ref[h]                                    # (tk, d)

        # energy/sqrt(E) = q_scaled @ k.T without materializing a transpose.
        s = jax.lax.dot_general(qh, kh, (((1,), (1,)), ((), ())),
                                preferred_element_type=jnp.float32)   # (tq, tk)
        if has_mask:
            s = s + mbias                                # masked_fill(-1e20) semantics

        # online softmax update (flash-style)
        m_prev = m_sc[h]                                 # (tq, 1)
        m_new = jnp.maximum(m_prev, jnp.max(s, axis=-1, keepdims=True))
        alpha = jnp.exp(m_prev - m_new)
        p = jnp.exp(s - m_new)                           # (tq, tk)
        l_sc[h] = alpha * l_sc[h] + jnp.sum(p, axis=-1, keepdims=True)
        acc_sc[h] = alpha * acc_sc[h] + jnp.dot(
            p.astype(compute_dtype), vh, preferred_element_type=jnp.float32)
        m_sc[h] = m_new

    # ---- finalize: normalize, fc_out as per-head matmuls into lane-dense (tq,E)
    @pl.when(ki == pl.num_programs(2) - 1)
    def _():
        inv_l = pl.reciprocal(l_sc[...], approx=True)    # EUP slot, ~free
        out = bfc_ref[...].astype(jnp.float32)           # (1, E), broadcasts
        for h in range(heads):
            ctx = (acc_sc[h] * inv_l[h]).astype(compute_dtype)        # (tq, d)
            out = out + jnp.dot(ctx, wfc_ref[h],
                                preferred_element_type=jnp.float32)   # (tq, E)
        o_ref[...] = out.astype(o_ref.dtype)


def _pick_tile(length, target, multiple):
    """Largest tile <= target that is a multiple of `multiple` and divides length.
    Falls back to the full length (hazard only for very long, prime-ish seqs)."""
    if length <= max(target, multiple):
        return length
    t = (min(target, length) // multiple) * multiple
    while t >= multiple:
        if length % t == 0:
            return t
        t -= multiple
    return length


def self_attention_pallas(values, keys, query, mask,
                          wv, wk, wq, wfc, bfc, heads,
                          *, q_tile=256, k_tile=512, compute_dtype=jnp.float32):
    """values/keys/query: (N, L, E) f32; mask: (N, 1, q_len, k_len) or None.
    compute_dtype=jnp.bfloat16 feeds the MXU in bf16 (recommended on v6e/v7x);
    softmax math and accumulation remain f32."""
    N, q_len, E = query.shape
    k_len = keys.shape[1]
    assert values.shape[1] == k_len
    d = E // heads
    assert d * heads == E
    scale = 1.0 / (float(E) ** 0.5)

    # ---- hoisted shared per-head projections (single XLA batched matmul each),
    #      laid out (N, heads, L, d) so per-head kernel access is leading-axis.
    def proj(x, w):                                      # nn.Linear: y = x @ w.T
        xh = x.reshape(N, -1, heads, d)
        return jnp.einsum('nlhd,ed->nhle', xh, w)

    q_p = (proj(query, wq) * scale).astype(compute_dtype)   # softmax scale folded in
    k_p = proj(keys, wk).astype(compute_dtype)
    v_p = proj(values, wv).astype(compute_dtype)

    wfc3 = wfc.T.reshape(heads, d, E).astype(compute_dtype)  # (heads, d, E)
    bias2d = bfc.reshape(1, E).astype(jnp.float32)

    has_mask = mask is not None
    if has_mask:
        # additive bf16 bias (half the DMA of int32): 0 = keep, -1e20 = masked
        m2d = mask.reshape(N, q_len, k_len)
        mbias = jnp.where(m2d == 0, jnp.float32(-1e20),
                          jnp.float32(0.0)).astype(jnp.bfloat16)

    tq = _pick_tile(q_len, q_tile, 16)     # sublane multiple of 16 (bf16 packing)
    tk = _pick_tile(k_len, k_tile, 128)    # lane dim of the mask-bias block
    n_q = q_len // tq
    n_k = k_len // tk

    kernel = functools.partial(_mha_kernel, heads=heads,
                               compute_dtype=compute_dtype, has_mask=has_mask)

    in_specs = [
        pl.BlockSpec((None, heads, tq, d), lambda n, qi, ki: (n, 0, qi, 0)),   # q
        pl.BlockSpec((None, heads, tk, d), lambda n, qi, ki: (n, 0, ki, 0)),   # k
        pl.BlockSpec((None, heads, tk, d), lambda n, qi, ki: (n, 0, ki, 0)),   # v
    ]
    inputs = [q_p, k_p, v_p]
    if has_mask:
        in_specs.append(pl.BlockSpec((None, tq, tk), lambda n, qi, ki: (n, qi, ki)))
        inputs.append(mbias)
    in_specs += [
        pl.BlockSpec((heads, d, E), lambda n, qi, ki: (0, 0, 0)),   # fc weight
        pl.BlockSpec((1, E), lambda n, qi, ki: (0, 0)),             # fc bias
    ]
    inputs += [wfc3, bias2d]

    # ---- generation-aware VMEM budget (~48 MiB on v7x, ~96 MiB on v5e/v6e)
    try:
        cap = int(getattr(pltpu.get_tpu_info(), "vmem_capacity_bytes", 128 * 2**20))
    except Exception:
        cap = 128 * 2**20
    budget = int(cap * 3 // 4)
    isz = jnp.dtype(compute_dtype).itemsize
    block_bytes = (
        2 * (tq * E + 2 * tk * E) * isz                 # q + k + v blocks (dbl-buf)
        + (2 * tq * tk * 2 if has_mask else 0)          # bf16 mask-bias block
        + 2 * (E * E * isz + E * 4)                     # fc weight + bias (dbl-buf)
        + 2 * tq * E * 4                                # output block
        + tq * E * 4 + 2 * heads * tq * 4               # acc / m / l scratch
    )
    vmem_limit = int(min(budget, max(32 * 2**20, 2 * block_bytes)))

    grid_spec = pltpu.PrefetchScalarGridSpec(
        num_scalar_prefetch=0,
        grid=(N, n_q, n_k),
        in_specs=in_specs,
        out_specs=pl.BlockSpec((None, tq, E), lambda n, qi, ki: (n, qi, 0)),
        scratch_shapes=[
            pltpu.VMEM((heads, tq, 1), jnp.float32),    # running max
            pltpu.VMEM((heads, tq, 1), jnp.float32),    # running denominator
            pltpu.VMEM((heads, tq, d), jnp.float32),    # running numerator
        ],
    )

    return pl.pallas_call(
        kernel,
        out_shape=jax.ShapeDtypeStruct((N, q_len, E), jnp.float32),
        grid_spec=grid_spec,
        compiler_params=pltpu.CompilerParams(
            dimension_semantics=("parallel", "parallel", "arbitrary"),
            vmem_limit_bytes=vmem_limit),
    )(*inputs)


def self_attention_ref(values, keys, query, mask, wv, wk, wq, wfc, bfc, heads):
    """Pure-JAX reference mirroring the PyTorch forward."""
    N, q_len, E = query.shape
    d = E // heads
    v = values.reshape(N, -1, heads, d) @ wv.T
    k = keys.reshape(N, -1, heads, d) @ wk.T
    q = query.reshape(N, -1, heads, d) @ wq.T
    energy = jnp.einsum('nqhd,nkhd->nhqk', q, k)
    if mask is not None:
        energy = jnp.where(mask == 0, jnp.float32(-1e20), energy)
    attn = jax.nn.softmax(energy / (E ** 0.5), axis=3)
    out = jnp.einsum('nhql,nlhd->nqhd', attn, v).reshape(N, q_len, heads * d)
    return out @ wfc.T + bfc


if __name__ == "__main__":
    # Small shapes consistent with the module.
    N, seq, embed_size, heads = 2, 8, 32, 2
    head_dim = embed_size // heads

    key = jax.random.PRNGKey(0)
    k1, k2, k3, k4, k5, k6, k7, k8 = jax.random.split(key, 8)

    values = jax.random.normal(k1, (N, seq, embed_size), dtype=jnp.float32)
    keys_in = jax.random.normal(k2, (N, seq, embed_size), dtype=jnp.float32)
    query = jax.random.normal(k3, (N, seq, embed_size), dtype=jnp.float32)

    # Causal mask broadcast over heads: (N, 1, q_len, k_len), 1 = keep.
    mask = (jnp.tril(jnp.ones((seq, seq), dtype=jnp.int32))
            .reshape(1, 1, seq, seq).repeat(N, axis=0))

    # Deterministic nn.Linear-style parameter init.
    lim_h = 1.0 / (head_dim ** 0.5)
    lim_e = 1.0 / (embed_size ** 0.5)
    wv = jax.random.uniform(k4, (head_dim, head_dim), jnp.float32, -lim_h, lim_h)
    wk = jax.random.uniform(k5, (head_dim, head_dim), jnp.float32, -lim_h, lim_h)
    wq = jax.random.uniform(k6, (head_dim, head_dim), jnp.float32, -lim_h, lim_h)
    wfc = jax.random.uniform(k7, (embed_size, embed_size), jnp.float32, -lim_e, lim_e)
    bfc = jax.random.uniform(k8, (embed_size,), jnp.float32, -lim_e, lim_e)

    # --- 1) small-shape check with mask (single tile) ---
    out = self_attention_pallas(values, keys_in, query, mask,
                                wv, wk, wq, wfc, bfc, heads)
    out = jax.block_until_ready(out)
    ref = self_attention_ref(values, keys_in, query, mask,
                             wv, wk, wq, wfc, bfc, heads)
    np.testing.assert_allclose(np.asarray(out), np.asarray(ref),
                               atol=2e-3, rtol=2e-3)   # approx reciprocal slack

    # --- 2) mask=None specialization (no mask stream / select) ---
    out_nm = self_attention_pallas(values, keys_in, query, None,
                                   wv, wk, wq, wfc, bfc, heads)
    out_nm = jax.block_until_ready(out_nm)
    ref_nm = self_attention_ref(values, keys_in, query, None,
                                wv, wk, wq, wfc, bfc, heads)
    np.testing.assert_allclose(np.asarray(out_nm), np.asarray(ref_nm),
                               atol=2e-3, rtol=2e-3)

    # --- 3) multi-tile flash path (2 q tiles x 2 k tiles), f32 ---
    seq2 = 256
    v2 = jax.random.normal(k1, (N, seq2, embed_size), dtype=jnp.float32)
    key2 = jax.random.normal(k2, (N, seq2, embed_size), dtype=jnp.float32)
    q2 = jax.random.normal(k3, (N, seq2, embed_size), dtype=jnp.float32)
    mask2 = (jnp.tril(jnp.ones((seq2, seq2), dtype=jnp.int32))
             .reshape(1, 1, seq2, seq2).repeat(N, axis=0))
    out2 = self_attention_pallas(v2, key2, q2, mask2, wv, wk, wq, wfc, bfc, heads,
                                 q_tile=128, k_tile=128)
    out2 = jax.block_until_ready(out2)
    ref2 = self_attention_ref(v2, key2, q2, mask2, wv, wk, wq, wfc, bfc, heads)
    np.testing.assert_allclose(np.asarray(out2), np.asarray(ref2),
                               atol=2e-3, rtol=2e-3)

    # --- 4) bf16 compute path (MXU-friendly on v6e/v7x), looser tolerance ---
    out3 = self_attention_pallas(v2, key2, q2, mask2, wv, wk, wq, wfc, bfc, heads,
                                 q_tile=128, k_tile=128,
                                 compute_dtype=jnp.bfloat16)
    out3 = jax.block_until_ready(out3)
    np.testing.assert_allclose(np.asarray(out3), np.asarray(ref2),
                               atol=5e-2, rtol=5e-2)

    print("KERNEL_OK")
</pallas_src>

<mosaic_0001>
module attributes {stable_mosaic.version = 11 : i64} {
  func.func @_mha_kernel(%arg0: i32, %arg1: i32, %arg2: i32, %arg3: memref<1x2x8x16xf32, #tpu.memory_space<vmem>>, %arg4: memref<1x2x8x16xf32, #tpu.memory_space<vmem>>, %arg5: memref<1x2x8x16xf32, #tpu.memory_space<vmem>>, %arg6: memref<1x8x8xbf16, #tpu.memory_space<vmem>>, %arg7: memref<2x16x32xf32, #tpu.memory_space<vmem>>, %arg8: memref<1x32xf32, #tpu.memory_space<vmem>>, %arg9: memref<1x8x32xf32, #tpu.memory_space<vmem>>, %arg10: memref<2x8x1xf32, #tpu.memory_space<vmem>>, %arg11: memref<2x8x1xf32, #tpu.memory_space<vmem>>, %arg12: memref<2x8x16xf32, #tpu.memory_space<vmem>>) attributes {dimension_semantics = [#tpu.dimension_semantics<parallel>, #tpu.dimension_semantics<parallel>, #tpu.dimension_semantics<arbitrary>], iteration_bounds = array<i64: 2, 1, 1>, scalar_prefetch = 0 : i64, scratch_operands = 3 : i64, tpu.core_type = #tpu.core_type<tc>, window_params = [{transform_indices = @transform_0, window_bounds = array<i64: 1, 2, 8, 16>}, {transform_indices = @transform_1, window_bounds = array<i64: 1, 2, 8, 16>}, {transform_indices = @transform_2, window_bounds = array<i64: 1, 2, 8, 16>}, {transform_indices = @transform_3, window_bounds = array<i64: 1, 8, 8>}, {pipeline_mode = #tpu.pipeline_mode<synchronous>, transform_indices = @transform_4, window_bounds = array<i64: 2, 16, 32>}, {pipeline_mode = #tpu.pipeline_mode<synchronous>, transform_indices = @transform_5, window_bounds = array<i64: 1, 32>}, {transform_indices = @transform_6, window_bounds = array<i64: 1, 8, 32>}]} {
    %c0_i32 = arith.constant 0 : i32
    %0 = arith.cmpi eq, %arg2, %c0_i32 : i32
    %1 = arith.extui %0 : i1 to i32
    %c0_i32_0 = arith.constant 0 : i32
    %2 = arith.cmpi ne, %1, %c0_i32_0 : i32
    scf.if %2 {
      %cst_71 = arith.constant 0xFF800000 : f32
      %87 = vector.broadcast %cst_71 : f32 to vector<2x8x1xf32>
      %c0_72 = arith.constant 0 : index
      %c0_73 = arith.constant 0 : index
      %c0_74 = arith.constant 0 : index
      %88 = vector.load %arg10[%c0_72, %c0_73, %c0_74] : memref<2x8x1xf32, #tpu.memory_space<vmem>>, vector<2x8x1xf32>
      tpu.vector_store %arg10[%c0_72, %c0_73, %c0_74], %87 {strides = array<i32>} : memref<2x8x1xf32, #tpu.memory_space<vmem>>, vector<2x8x1xf32>,
      %cst_75 = arith.constant 0.000000e+00 : f32
      %89 = vector.broadcast %cst_75 : f32 to vector<2x8x1xf32>
      %c0_76 = arith.constant 0 : index
      %c0_77 = arith.constant 0 : index
      %c0_78 = arith.constant 0 : index
      %90 = vector.load %arg11[%c0_76, %c0_77, %c0_78] : memref<2x8x1xf32, #tpu.memory_space<vmem>>, vector<2x8x1xf32>
      tpu.vector_store %arg11[%c0_76, %c0_77, %c0_78], %89 {strides = array<i32>} : memref<2x8x1xf32, #tpu.memory_space<vmem>>, vector<2x8x1xf32>,
      %cst_79 = arith.constant 0.000000e+00 : f32
      %91 = vector.broadcast %cst_79 : f32 to vector<2x8x16xf32>
      %c0_80 = arith.constant 0 : index
      %c0_81 = arith.constant 0 : index
      %c0_82 = arith.constant 0 : index
      %92 = vector.load %arg12[%c0_80, %c0_81, %c0_82] : memref<2x8x16xf32, #tpu.memory_space<vmem>>, vector<2x8x16xf32>
      tpu.vector_store %arg12[%c0_80, %c0_81, %c0_82], %91 {strides = array<i32>} : memref<2x8x16xf32, #tpu.memory_space<vmem>>, vector<2x8x16xf32>,
    } else {
    }
    %c0 = arith.constant 0 : index
    %c0_1 = arith.constant 0 : index
    %c0_2 = arith.constant 0 : index
    %3 = vector.load %arg6[%c0, %c0_1, %c0_2] : memref<1x8x8xbf16, #tpu.memory_space<vmem>>, vector<1x8x8xbf16>
    %4 = vector.shape_cast %3 : vector<1x8x8xbf16> to vector<8x8xbf16>
    %5 = arith.extf %4 : vector<8x8xbf16> to vector<8x8xf32>
    %c0_3 = arith.constant 0 : index
    %c0_4 = arith.constant 0 : index
    %c0_5 = arith.constant 0 : index
    %c0_6 = arith.constant 0 : index
    %6 = vector.load %arg3[%c0_3, %c0_4, %c0_5, %c0_6] : memref<1x2x8x16xf32, #tpu.memory_space<vmem>>, vector<1x1x8x16xf32>
    %7 = vector.shape_cast %6 : vector<1x1x8x16xf32> to vector<8x16xf32>
    %c0_7 = arith.constant 0 : index
    %c0_8 = arith.constant 0 : index
    %c0_9 = arith.constant 0 : index
    %c0_10 = arith.constant 0 : index
    %8 = vector.load %arg4[%c0_7, %c0_8, %c0_9, %c0_10] : memref<1x2x8x16xf32, #tpu.memory_space<vmem>>, vector<1x1x8x16xf32>
    %9 = vector.shape_cast %8 : vector<1x1x8x16xf32> to vector<8x16xf32>
    %c0_11 = arith.constant 0 : index
    %c0_12 = arith.constant 0 : index
    %c0_13 = arith.constant 0 : index
    %c0_14 = arith.constant 0 : index
    %10 = vector.load %arg5[%c0_11, %c0_12, %c0_13, %c0_14] : memref<1x2x8x16xf32, #tpu.memory_space<vmem>>, vector<1x1x8x16xf32>
    %11 = vector.shape_cast %10 : vector<1x1x8x16xf32> to vector<8x16xf32>
    %cst = arith.constant dense<0.000000e+00> : vector<8x8xf32>
    %12 = tpu.matmul %7, %9, %cst {dimension_numbers = #tpu.dot_dimension_numbers<[1], [1], [0], [0], [0, 0, 1, 0], [], []>} : vector<8x16xf32>, vector<8x16xf32>, vector<8x8xf32> -> vector<8x8xf32>
    %13 = arith.addf %12, %5 : vector<8x8xf32>
    %c0_15 = arith.constant 0 : index
    %c0_16 = arith.constant 0 : index
    %c0_17 = arith.constant 0 : index
    %14 = vector.load %arg10[%c0_15, %c0_16, %c0_17] : memref<2x8x1xf32, #tpu.memory_space<vmem>>, vector<1x8x1xf32>
    %15 = vector.shape_cast %14 : vector<1x8x1xf32> to vector<8x1xf32>
    %cst_18 = arith.constant dense<0xFF800000> : vector<8xf32>
    %16 = vector.multi_reduction <maximumf>, %13, %cst_18 [1] : vector<8x8xf32> to vector<8xf32>
    %17 = vector.shape_cast %16 : vector<8xf32> to vector<8x1xf32>
    %18 = arith.maximumf %15, %17 : vector<8x1xf32>
    %19 = arith.subf %15, %18 : vector<8x1xf32>
    %20 = math.exp %19 : vector<8x1xf32>
    %21 = vector.broadcast %18 : vector<8x1xf32> to vector<8x8xf32>
    %22 = arith.subf %13, %21 : vector<8x8xf32>
    %23 = math.exp %22 : vector<8x8xf32>
    %c0_19 = arith.constant 0 : index
    %c0_20 = arith.constant 0 : index
    %c0_21 = arith.constant 0 : index
    %24 = vector.load %arg11[%c0_19, %c0_20, %c0_21] : memref<2x8x1xf32, #tpu.memory_space<vmem>>, vector<1x8x1xf32>
    %25 = vector.shape_cast %24 : vector<1x8x1xf32> to vector<8x1xf32>
    %26 = arith.mulf %20, %25 : vector<8x1xf32>
    %cst_22 = arith.constant dense<0.000000e+00> : vector<8xf32>
    %27 = vector.multi_reduction <add>, %23, %cst_22 [1] : vector<8x8xf32> to vector<8xf32>
    %28 = vector.shape_cast %27 : vector<8xf32> to vector<8x1xf32>
    %29 = arith.addf %26, %28 : vector<8x1xf32>
    %c0_23 = arith.constant 0 : index
    %c0_24 = arith.constant 0 : index
    %c0_25 = arith.constant 0 : index
    %30 = vector.load %arg11[%c0_23, %c0_24, %c0_25] : memref<2x8x1xf32, #tpu.memory_space<vmem>>, vector<1x8x1xf32>
    %31 = vector.shape_cast %30 : vector<1x8x1xf32> to vector<8x1xf32>
    %32 = vector.shape_cast %29 : vector<8x1xf32> to vector<1x8x1xf32>
    tpu.vector_store %arg11[%c0_23, %c0_24, %c0_25], %32 {strides = array<i32>} : memref<2x8x1xf32, #tpu.memory_space<vmem>>, vector<1x8x1xf32>,
    %c0_26 = arith.constant 0 : index
    %c0_27 = arith.constant 0 : index
    %c0_28 = arith.constant 0 : index
    %33 = vector.load %arg12[%c0_26, %c0_27, %c0_28] : memref<2x8x16xf32, #tpu.memory_space<vmem>>, vector<1x8x16xf32>
    %34 = vector.shape_cast %33 : vector<1x8x16xf32> to vector<8x16xf32>
    %35 = vector.broadcast %20 : vector<8x1xf32> to vector<8x16xf32>
    %36 = arith.mulf %35, %34 : vector<8x16xf32>
    %cst_29 = arith.constant dense<0.000000e+00> : vector<8x16xf32>
    %37 = tpu.matmul %23, %11, %cst_29 {dimension_numbers = #tpu.dot_dimension_numbers<[1], [0], [0], [1], [0, 0, 1, 1], [], []>} : vector<8x8xf32>, vector<8x16xf32>, vector<8x16xf32> -> vector<8x16xf32>
    %38 = arith.addf %36, %37 : vector<8x16xf32>
    %c0_30 = arith.constant 0 : index
    %c0_31 = arith.constant 0 : index
    %c0_32 = arith.constant 0 : index
    %39 = vector.load %arg12[%c0_30, %c0_31, %c0_32] : memref<2x8x16xf32, #tpu.memory_space<vmem>>, vector<1x8x16xf32>
    %40 = vector.shape_cast %39 : vector<1x8x16xf32> to vector<8x16xf32>
    %41 = vector.shape_cast %38 : vector<8x16xf32> to vector<1x8x16xf32>
    tpu.vector_store %arg12[%c0_30, %c0_31, %c0_32], %41 {strides = array<i32>} : memref<2x8x16xf32, #tpu.memory_space<vmem>>, vector<1x8x16xf32>,
    %c0_33 = arith.constant 0 : index
    %c0_34 = arith.constant 0 : index
    %c0_35 = arith.constant 0 : index
    %42 = vector.load %arg10[%c0_33, %c0_34, %c0_35] : memref<2x8x1xf32, #tpu.memory_space<vmem>>, vector<1x8x1xf32>
    %43 = vector.shape_cast %42 : vector<1x8x1xf32> to vector<8x1xf32>
    %44 = vector.shape_cast %18 : vector<8x1xf32> to vector<1x8x1xf32>
    tpu.vector_store %arg10[%c0_33, %c0_34, %c0_35], %44 {strides = array<i32>} : memref<2x8x1xf32, #tpu.memory_space<vmem>>, vector<1x8x1xf32>,
    %c0_36 = arith.constant 0 : index
    %c1 = arith.constant 1 : index
    %c0_37 = arith.constant 0 : index
    %c0_38 = arith.constant 0 : index
    %45 = vector.load %arg3[%c0_36, %c1, %c0_37, %c0_38] : memref<1x2x8x16xf32, #tpu.memory_space<vmem>>, vector<1x1x8x16xf32>
    %46 = vector.shape_cast %45 : vector<1x1x8x16xf32> to vector<8x16xf32>
    %c0_39 = arith.constant 0 : index
    %c1_40 = arith.constant 1 : index
    %c0_41 = arith.constant 0 : index
    %c0_42 = arith.constant 0 : index
    %47 = vector.load %arg4[%c0_39, %c1_40, %c0_41, %c0_42] : memref<1x2x8x16xf32, #tpu.memory_space<vmem>>, vector<1x1x8x16xf32>
    %48 = vector.shape_cast %47 : vector<1x1x8x16xf32> to vector<8x16xf32>
    %c0_43 = arith.constant 0 : index
    %c1_44 = arith.constant 1 : index
    %c0_45 = arith.constant 0 : index
    %c0_46 = arith.constant 0 : index
    %49 = vector.load %arg5[%c0_43, %c1_44, %c0_45, %c0_46] : memref<1x2x8x16xf32, #tpu.memory_space<vmem>>, vector<1x1x8x16xf32>
    %50 = vector.shape_cast %49 : vector<1x1x8x16xf32> to vector<8x16xf32>
    %cst_47 = arith.constant dense<0.000000e+00> : vector<8x8xf32>
    %51 = tpu.matmul %46, %48, %cst_47 {dimension_numbers = #tpu.dot_dimension_numbers<[1], [1], [0], [0], [0, 0, 1, 0], [], []>} : vector<8x16xf32>, vector<8x16xf32>, vector<8x8xf32> -> vector<8x8xf32>
    %52 = arith.addf %51, %5 : vector<8x8xf32>
    %c1_48 = arith.constant 1 : index
    %c0_49 = arith.constant 0 : index
    %c0_50 = arith.constant 0 : index
    %53 = vector.load %arg10[%c1_48, %c0_49, %c0_50] : memref<2x8x1xf32, #tpu.memory_space<vmem>>, vector<1x8x1xf32>
    %54 = vector.shape_cast %53 : vector<1x8x1xf32> to vector<8x1xf32>
    %cst_51 = arith.constant dense<0xFF800000> : vector<8xf32>
    %55 = vector.multi_reduction <maximumf>, %52, %cst_51 [1] : vector<8x8xf32> to vector<8xf32>
    %56 = vector.shape_cast %55 : vector<8xf32> to vector<8x1xf32>
    %57 = arith.maximumf %54, %56 : vector<8x1xf32>
    %58 = arith.subf %54, %57 : vector<8x1xf32>
    %59 = math.exp %58 : vector<8x1xf32>
    %60 = vector.broadcast %57 : vector<8x1xf32> to vector<8x8xf32>
    %61 = arith.subf %52, %60 : vector<8x8xf32>
    %62 = math.exp %61 : vector<8x8xf32>
    %c1_52 = arith.constant 1 : index
    %c0_53 = arith.constant 0 : index
    %c0_54 = arith.constant 0 : index
    %63 = vector.load %arg11[%c1_52, %c0_53, %c0_54] : memref<2x8x1xf32, #tpu.memory_space<vmem>>, vector<1x8x1xf32>
    %64 = vector.shape_cast %63 : vector<1x8x1xf32> to vector<8x1xf32>
    %65 = arith.mulf %59, %64 : vector<8x1xf32>
    %cst_55 = arith.constant dense<0.000000e+00> : vector<8xf32>
    %66 = vector.multi_reduction <add>, %62, %cst_55 [1] : vector<8x8xf32> to vector<8xf32>
    %67 = vector.shape_cast %66 : vector<8xf32> to vector<8x1xf32>
    %68 = arith.addf %65, %67 : vector<8x1xf32>
    %c1_56 = arith.constant 1 : index
    %c0_57 = arith.constant 0 : index
    %c0_58 = arith.constant 0 : index
    %69 = vector.load %arg11[%c1_56, %c0_57, %c0_58] : memref<2x8x1xf32, #tpu.memory_space<vmem>>, vector<1x8x1xf32>
    %70 = vector.shape_cast %69 : vector<1x8x1xf32> to vector<8x1xf32>
    %71 = vector.shape_cast %68 : vector<8x1xf32> to vector<1x8x1xf32>
    tpu.vector_store %arg11[%c1_56, %c0_57, %c0_58], %71 {strides = array<i32>} : memref<2x8x1xf32, #tpu.memory_space<vmem>>, vector<1x8x1xf32>,
    %c1_59 = arith.constant 1 : index
    %c0_60 = arith.constant 0 : index
    %c0_61 = arith.constant 0 : index
    %72 = vector.load %arg12[%c1_59, %c0_60, %c0_61] : memref<2x8x16xf32, #tpu.memory_space<vmem>>, vector<1x8x16xf32>
    %73 = vector.shape_cast %72 : vector<1x8x16xf32> to vector<8x16xf32>
    %74 = vector.broadcast %59 : vector<8x1xf32> to vector<8x16xf32>
    %75 = arith.mulf %74, %73 : vector<8x16xf32>
    %cst_62 = arith.constant dense<0.000000e+00> : vector<8x16xf32>
    %76 = tpu.matmul %62, %50, %cst_62 {dimension_numbers = #tpu.dot_dimension_numbers<[1], [0], [0], [1], [0, 0, 1, 1], [], []>} : vector<8x8xf32>, vector<8x16xf32>, vector<8x16xf32> -> vector<8x16xf32>
    %77 = arith.addf %75, %76 : vector<8x16xf32>
    %c1_63 = arith.constant 1 : index
    %c0_64 = arith.constant 0 : index
    %c0_65 = arith.constant 0 : index
    %78 = vector.load %arg12[%c1_63, %c0_64, %c0_65] : memref<2x8x16xf32, #tpu.memory_space<vmem>>, vector<1x8x16xf32>
    %79 = vector.shape_cast %78 : vector<1x8x16xf32> to vector<8x16xf32>
    %80 = vector.shape_cast %77 : vector<8x16xf32> to vector<1x8x16xf32>
    tpu.vector_store %arg12[%c1_63, %c0_64, %c0_65], %80 {strides = array<i32>} : memref<2x8x16xf32, #tpu.memory_space<vmem>>, vector<1x8x16xf32>,
    %c1_66 = arith.constant 1 : index
    %c0_67 = arith.constant 0 : index
    %c0_68 = arith.constant 0 : index
    %81 = vector.load %arg10[%c1_66, %c0_67, %c0_68] : memref<2x8x1xf32, #tpu.memory_space<vmem>>, vector<1x8x1xf32>
    %82 = vector.shape_cast %81 : vector<1x8x1xf32> to vector<8x1xf32>
    %83 = vector.shape_cast %57 : vector<8x1xf32> to vector<1x8x1xf32>
    tpu.vector_store %arg10[%c1_66, %c0_67, %c0_68], %83 {strides = array<i32>} : memref<2x8x1xf32, #tpu.memory_space<vmem>>, vector<1x8x1xf32>,
    %c0_i32_69 = arith.constant 0 : i32
    %84 = arith.cmpi eq, %arg2, %c0_i32_69 : i32
    %85 = arith.extui %84 : i1 to i32
    %c0_i32_70 = arith.constant 0 : i32
    %86 = arith.cmpi ne, %85, %c0_i32_70 : i32
    scf.if %86 {
      %c0_71 = arith.constant 0 : index
      %c0_72 = arith.constant 0 : index
      %c0_73 = arith.constant 0 : index
      %87 = vector.load %arg11[%c0_71, %c0_72, %c0_73] : memref<2x8x1xf32, #tpu.memory_space<vmem>>, vector<2x8x1xf32>
      %88 = tpu.reciprocal %87 {approx = true} : vector<2x8x1xf32> -> vector<2x8x1xf32>
      %c0_74 = arith.constant 0 : index
      %c0_75 = arith.constant 0 : index
      %89 = vector.load %arg8[%c0_74, %c0_75] : memref<1x32xf32, #tpu.memory_space<vmem>>, vector<1x32xf32>
      %c0_76 = arith.constant 0 : index
      %c0_77 = arith.constant 0 : index
      %c0_78 = arith.constant 0 : index
      %90 = vector.load %arg12[%c0_76, %c0_77, %c0_78] : memref<2x8x16xf32, #tpu.memory_space<vmem>>, vector<1x8x16xf32>
      %91 = vector.shape_cast %90 : vector<1x8x16xf32> to vector<8x16xf32>
      %92 = vector.extract_strided_slice %88 {offsets = [0, 0, 0], sizes = [1, 8, 1], strides = [1, 1, 1]} : vector<2x8x1xf32> to vector<1x8x1xf32>
      %93 = vector.shape_cast %92 : vector<1x8x1xf32> to vector<8x1xf32>
      %94 = vector.broadcast %93 : vector<8x1xf32> to vector<8x16xf32>
      %95 = arith.mulf %91, %94 : vector<8x16xf32>
      %c0_79 = arith.constant 0 : index
      %c0_80 = arith.constant 0 : index
      %c0_81 = arith.constant 0 : index
      %96 = vector.load %arg7[%c0_79, %c0_80, %c0_81] : memref<2x16x32xf32, #tpu.memory_space<vmem>>, vector<1x16x32xf32>
      %97 = vector.shape_cast %96 : vector<1x16x32xf32> to vector<16x32xf32>
      %cst_82 = arith.constant dense<0.000000e+00> : vector<8x32xf32>
      %98 = tpu.matmul %95, %97, %cst_82 {dimension_numbers = #tpu.dot_dimension_numbers<[1], [0], [0], [1], [0, 0, 1, 1], [], []>} : vector<8x16xf32>, vector<16x32xf32>, vector<8x32xf32> -> vector<8x32xf32>
      %99 = vector.broadcast %89 : vector<1x32xf32> to vector<8x32xf32>
      %100 = arith.addf %99, %98 : vector<8x32xf32>
      %c1_83 = arith.constant 1 : index
      %c0_84 = arith.constant 0 : index
      %c0_85 = arith.constant 0 : index
      %101 = vector.load %arg12[%c1_83, %c0_84, %c0_85] : memref<2x8x16xf32, #tpu.memory_space<vmem>>, vector<1x8x16xf32>
      %102 = vector.shape_cast %101 : vector<1x8x16xf32> to vector<8x16xf32>
      %103 = vector.extract_strided_slice %88 {offsets = [1, 0, 0], sizes = [1, 8, 1], strides = [1, 1, 1]} : vector<2x8x1xf32> to vector<1x8x1xf32>
      %104 = vector.shape_cast %103 : vector<1x8x1xf32> to vector<8x1xf32>
      %105 = vector.broadcast %104 : vector<8x1xf32> to vector<8x16xf32>
      %106 = arith.mulf %102, %105 : vector<8x16xf32>
      %c1_86 = arith.constant 1 : index
      %c0_87 = arith.constant 0 : index
      %c0_88 = arith.constant 0 : index
      %107 = vector.load %arg7[%c1_86, %c0_87, %c0_88] : memref<2x16x32xf32, #tpu.memory_space<vmem>>, vector<1x16x32xf32>
      %108 = vector.shape_cast %107 : vector<1x16x32xf32> to vector<16x32xf32>
      %cst_89 = arith.constant dense<0.000000e+00> : vector<8x32xf32>
      %109 = tpu.matmul %106, %108, %cst_89 {dimension_numbers = #tpu.dot_dimension_numbers<[1], [0], [0], [1], [0, 0, 1, 1], [], []>} : vector<8x16xf32>, vector<16x32xf32>, vector<8x32xf32> -> vector<8x32xf32>
      %110 = arith.addf %100, %109 : vector<8x32xf32>
      %c0_90 = arith.constant 0 : index
      %c0_91 = arith.constant 0 : index
      %c0_92 = arith.constant 0 : index
      %111 = vector.load %arg9[%c0_90, %c0_91, %c0_92] : memref<1x8x32xf32, #tpu.memory_space<vmem>>, vector<1x8x32xf32>
      %112 = vector.shape_cast %111 : vector<1x8x32xf32> to vector<8x32xf32>
      %113 = vector.shape_cast %110 : vector<8x32xf32> to vector<1x8x32xf32>
      tpu.vector_store %arg9[%c0_90, %c0_91, %c0_92], %113 {strides = array<i32>} : memref<1x8x32xf32, #tpu.memory_space<vmem>>, vector<1x8x32xf32>,
    } else {
    }
    return
  }
  func.func @transform_0(%arg0: i32, %arg1: i32, %arg2: i32) -> (i32, i32, i32, i32) {
    %c0_i32 = arith.constant 0 : i32
    %c0_i32_0 = arith.constant 0 : i32
    %c0_i32_1 = arith.constant 0 : i32
    return %arg0, %c0_i32, %arg1, %c0_i32_0 : i32, i32, i32, i32
  }
  func.func @transform_1(%arg0: i32, %arg1: i32, %arg2: i32) -> (i32, i32, i32, i32) {
    %c0_i32 = arith.constant 0 : i32
    %c0_i32_0 = arith.constant 0 : i32
    %c0_i32_1 = arith.constant 0 : i32
    return %arg0, %c0_i32, %arg2, %c0_i32_0 : i32, i32, i32, i32
  }
  func.func @transform_2(%arg0: i32, %arg1: i32, %arg2: i32) -> (i32, i32, i32, i32) {
    %c0_i32 = arith.constant 0 : i32
    %c0_i32_0 = arith.constant 0 : i32
    %c0_i32_1 = arith.constant 0 : i32
    return %arg0, %c0_i32, %arg2, %c0_i32_0 : i32, i32, i32, i32
  }
  func.func @transform_3(%arg0: i32, %arg1: i32, %arg2: i32) -> (i32, i32, i32) {
    %c0_i32 = arith.constant 0 : i32
    return %arg0, %arg1, %arg2 : i32, i32, i32
  }
  func.func @transform_4(%arg0: i32, %arg1: i32, %arg2: i32) -> (i32, i32, i32) {
    %c0_i32 = arith.constant 0 : i32
    %c0_i32_0 = arith.constant 0 : i32
    %c0_i32_1 = arith.constant 0 : i32
    %c0_i32_2 = arith.constant 0 : i32
    return %c0_i32, %c0_i32_0, %c0_i32_1 : i32, i32, i32
  }
  func.func @transform_5(%arg0: i32, %arg1: i32, %arg2: i32) -> (i32, i32) {
    %c0_i32 = arith.constant 0 : i32
    %c0_i32_0 = arith.constant 0 : i32
    %c0_i32_1 = arith.constant 0 : i32
    return %c0_i32, %c0_i32_0 : i32, i32
  }
  func.func @transform_6(%arg0: i32, %arg1: i32, %arg2: i32) -> (i32, i32, i32) {
    %c0_i32 = arith.constant 0 : i32
    %c0_i32_0 = arith.constant 0 : i32
    return %arg0, %arg1, %c0_i32 : i32, i32, i32
  }
}

</mosaic_0001>

<bundles_post_ra>
// kernel: tpu_custom_call.1
= control target key start
LH: loop header
LB: loop body
LE: loop exit
PB: predicated region body
PF: predicated region fallthrough
CT: control target
= control target key end

     0   :  { %s2013_s0 = inlined_call_operand.hbm [shape: f32[2,2,8,16], index: 0, kind: input, shape index: {}]   ;;  %s2014_s1 = inlined_call_operand.hbm [shape: f32[2,2,8,16], index: 1, kind: input, shape index: {}]   ;;  %s2015_s2 = inlined_call_operand.hbm [shape: f32[2,2,8,16], index: 2, kind: input, shape index: {}]   ;;  %s2016_s3 = inlined_call_operand.vmem [shape: bf16[2,8,8], index: 3, kind: input, shape index: {}]   ;;  %s2017_s4 = inlined_call_operand.hbm [shape: f32[2,16,32], index: 4, kind: input, shape index: {}]   ;;  %s2018_s5 = inlined_call_operand.vmem [shape: f32[1,32], index: 5, kind: input, shape index: {}]   ;;  %s2019_s6 = inlined_call_operand.hbm [shape: f32[2,8,32], index: 6, kind: output, shape index: {}]  }
   0x1   :  { %2040 = sst [smem:[#allocation24_spill]] %s2013_s0 }
   0x2   :  { %2041 = sst [smem:[#allocation25_spill]] %s2014_s1 }
   0x3   :  { %11 = vsyncpa [#allocation6], 0 }
   0x4   :  { %13 = vsyncpa [#allocation6 + $0x1], 0 }
   0x5   :  { %14 = vsyncpa [#allocation9], 0 }
   0x6   :  { %16 = vsyncpa [#allocation9 + $0x1], 0 }
   0x7   :  { %17 = vsyncpa [#allocation12], 0 }
   0x8   :  { %18 = vsyncpa [#allocation7], 0 }
   0x9   :  { %20 = vsyncpa [#allocation7 + $0x1], 0  ;;  %s1639_s21 = smov 0   ;;  %s1641_s22 = smov 0  }
   0xa   :  { %s1643_s23 = smov 0   ;;  %s1645_s24 = smov 0  }
   0xb   :  { %s1647_s25 = smov 0   ;;  %s1649_s26 = smov 0  }
   0xc LB: > { %2042 = sst [smem:[#allocation18_spill]] %s1578_s23  ;;  %s45_s27 = sadd.s32 1, %s1586_s25  ;;  %s1590_s26 = sphi %s1649_s26, %s26_s26   ;;  %s1586_s25 = sphi %s1647_s25, %s2076_s25   ;;  %s1582_s24 = sphi %s1645_s24, %s2075_s24   ;;  %s1578_s23 = sphi %s1643_s23, %s2074_s23   ;;  %s1574_s22 = sphi %s1641_s22, %s2078_s22   ;;  %s1570_s21 = sphi %s1639_s21, %s2077_s21  }
   0xd   : > { %2043 = sst [smem:[#allocation19_spill]] %s1586_s25  ;;  %s54_s28 = sadd.s32 1, %s1578_s23 }
   0xe   : > { %2044 = sst [smem:[#allocation20_spill]] %s1590_s26  ;;  %p47_p0 = scmp.ge.s32.totalorder %s45_s27, 2 }
   0xf   : > { %p2020_p1 = scmp.ne.s32.totalorder %s1578_s23, %s1574_s22  ;;  %p62_p2 = scmp.eq.s32.totalorder %s1590_s26, 0 }
  0x10   : > { %s2080_s27 = smov (%p47_p0, %s45_s27), 0  ;;  %p1309_p6 = scmp.lt.s32.totalorder %s1590_s26, 2 }
  0x11   : > { %2045 = sst [smem:[#allocation21_spill]] %s2080_s27  ;;  %p63_p3 = por %p62_p2, %p2020_p1 }
  0x12   : > { %s49_s29 = ssub.s32 %s1586_s25, %s2080_s27  ;;  %s2025_s30 = sand.u32 1, %s1578_s23  }
  0x13   : > { %p52_p5 = scmp.eq.s32.totalorder %s49_s29, 0  ;;  %s1685_s7 = sshll.u32 %s1586_s25, 8 }
  0x14   : > { %s1692_s9 = sshll.u32 %s2025_s30, 4  ;;  %p1694_p7 = pnand %p1309_p6, %p63_p3 }
  0x15   : > { %s1688_s8 = scalar_select %p52_p5, %s1578_s23, %s54_s28  }
  0x16   : > { %s2047_s10 = scalar_select %p1694_p7, 1, 0 }
  0x17   : > { %2046 = sst [smem:[#allocation22_spill]] %s1688_s8  ;;  %s285_s11 = sand.u32 1, %s1590_s26  }
  0x18   : > { %s2048_s1 = sld [smem:[#allocation25_spill]]  ;;  %s289_s15 = scalar_lea.vmem [#allocation8], %s1692_s9 }
  0x19   : > { %s297_s16 = sshll.u32 %s289_s15, 4  ;;  %s1708_s17 = scalar_lea.sflag [#allocation9], %s285_s11  ;;  %s1706_s16 = int_to_ptr.vmem [resolvable:$true] %s297_s16 }
  0x1a   : > { %p1714_p9 = pneg %p1694_p7 }
  0x1c   : > { %s2049_s19 = scalar_select %p1714_p9, 1, 0 }
  0x1e   : > { %s1703_s14 = scalar_lea.hbm %s2048_s1, %s1685_s7  ;;  %s1387_s29 = scalar_lea.hbm %s2048_s1, 512 }
  0x1f   : > { %s1382_s18 = scalar_lea.hbm %s1703_s14, 256  ;;  %p1388_p12 = scmp.lt.u32.totalorder %s1703_s14, %s2048_s1 }
  0x20   : > { %p1383_p8 = scmp.ne.s32.totalorder %s1703_s14, %s1382_s18  ;;  %p1389_p13 = scmp.lt.u32.totalorder %s1387_s29, %s1382_s18 }
  0x21   : > { %p1391_p2 = scmp.lt.u32.totalorder %s1382_s18, %s1703_s14 }
  0x22   : > { %p1385_p10 = pnand %p1714_p9, %p1383_p8  ;;  %p1390_p0 = por %p1389_p13, %p1388_p12 }
  0x24   : > { %p1386_p11 = pneg %p1385_p10  ;;  %p1392_p3 = por %p1391_p2, %p1390_p0 }
  0x26   : > { %p1393_p5 = pnand %p1392_p3, %p1386_p11 }
  0x28   : > { %1396 = shalt.err (!%p1393_p5)
}
  0x29   : > { %s1397_s11 = scalar_lea.vmem %s1706_s16, 256  ;;  %s1592_s15 = smov [#allocation8]  }
  0x2a   : > { %p1398_p6 = scmp.ne.s32.totalorder %s1706_s16, %s1397_s11  ;;  %s1402_s20 = sshll.u32 %s1592_s15, 4  ;;  %s1403_s20 = int_to_ptr.vmem [resolvable:$false] %s1402_s20 }
  0x2b   : > { %s1404_s28 = scalar_lea.vmem %s1403_s20, 512  ;;  %p1405_p4 = scmp.lt.s32.totalorder %s1706_s16, %s1403_s20 }
  0x2c   : > { %p1400_p8 = pnand %p1398_p6, %p1714_p9  ;;  %p1406_p1 = scmp.lt.s32.totalorder %s1404_s28, %s1397_s11 }
  0x2e   : > { %p1401_p10 = pneg %p1400_p8  ;;  %p1407_p12 = por %p1406_p1, %p1405_p4 }
  0x30   : > { %p1408_p13 = pnand %p1407_p12, %p1401_p10 }
  0x32   : > { %1411 = shalt.err (!%p1408_p13)
}
  0x33   : > { %s2021_s18 = smov 128   ;;  %s2023_s29 = smov 8  }
  0x34   : > { %1300 = dma.hbm_to_vmem [thread:$0]  (!%p1694_p7), %s1703_s14, 256, %s1706_s16, %s1708_s17, %s2021_s18, %s2021_s18, %s2023_s29  }
  0x35   : > { %s1742_s12 = sadd.s32 4294967295, %s1590_s26   ;;  %s1182_s13 = sadd.s32 4294967294, %s1590_s26  }
  0x36   : > { %p67_p1 = scmp.ne.s32.totalorder %s1574_s22, %s1570_s21  ;;  %p2031_p4 = scmp.eq.s32.totalorder %s1742_s12, 0 }
  0x37   : > { %p221_p11 = scmp.eq.s32.totalorder %s1742_s12, 1  ;;  %p227_p0 = scmp.eq.s32.totalorder %s1182_s13, 1 }
  0x38   : > { %p1183_p2 = scmp.ge.s32.totalorder %s1590_s26, 1  ;;  %p1752_p3 = por %p2031_p4, %p67_p1 }
  0x39   : > { %p2051_p5 = scmp.ne.s32.totalorder %s1578_s23, %s1574_s22  ;;  %p1763_p8 = por %p227_p0, %p67_p1 }
  0x3a   : > { %s2050_s11 = scalar_select %p1752_p3, 1, 0 }
  0x3b   : > { %p1759_p6 = por %p221_p11, %p2051_p5  ;;  %p234_p10 = scmp.lt.s32.totalorder %s1590_s26, 3 }
  0x3c   : > { %s2053_s16 = scalar_select %p1763_p8, 1, 0 }
  0x3d   : > { %s2052_s14 = scalar_select %p1759_p6, 1, 0 }
  0x3e   : > { %2054 = sst [smem:[#allocation23_spill]] %s2053_s16  ;;  %p1768_p12 = pnand %p1183_p2, %p234_p10 }
  0x3f   : > { %s1595_s20 = smov [#allocation11]   ;;  %s2056_s0 = sld [smem:[#allocation24_spill]] }
  0x40   : > { %s2055_s15 = scalar_select %p1768_p12, 1, 0 }
  0x41   : > { %s246_s28 = sshll.u32 %s1595_s20, 4  ;;  %p1290_p13 = pneg %p1768_p12  ;;  %s1772_s28 = int_to_ptr.vmem [resolvable:$true] %s246_s28 }
  0x42   : > { %s267_s30 = scalar_lea.vmem [#allocation5], %s1692_s9  ;;  %s2058_s20 = sand.u32 1, %s1578_s23  }
  0x43   : > { %s275_s1 = sshll.u32 %s267_s30, 4  ;;  %p1785_p1 = pnand %p1290_p13, %p2031_p4  ;;  %s1789_s1 = int_to_ptr.vmem [resolvable:$true] %s275_s1 }
  0x44   : > { %s1793_s25 = scalar_lea.sflag [#allocation6], %s2058_s20 }
  0x45   : > { %s1780_s29 = scalar_lea.hbm %s2056_s0, %s1685_s7  ;;  %s1417_s26 = scalar_lea.hbm %s2056_s0, 512 }
  0x46   : > { %s2057_s27 = scalar_select %p1785_p1, 1, 0 }
  0x47   : > { %s1412_s8 = scalar_lea.hbm %s1780_s29, 256  ;;  %p1418_p5 = scmp.lt.u32.totalorder %s1780_s29, %s2056_s0 }
  0x48   : > { %p1413_p11 = scmp.ne.s32.totalorder %s1780_s29, %s1412_s8  ;;  %p1419_p10 = scmp.lt.u32.totalorder %s1417_s26, %s1412_s8 }
  0x49   : > { %p1421_p4 = scmp.lt.u32.totalorder %s1412_s8, %s1780_s29 }
  0x4a   : > { %p1415_p0 = pnand %p1413_p11, %p1714_p9  ;;  %p1420_p13 = por %p1419_p10, %p1418_p5 }
  0x4c   : > { %p1416_p2 = pneg %p1415_p0  ;;  %p1422_p8 = por %p1421_p4, %p1420_p13 }
  0x4e   : > { %p1423_p6 = pnand %p1422_p8, %p1416_p2 }
  0x50   : > { %1426 = shalt.err (!%p1423_p6)
}
  0x51   : > { %s1427_s20 = scalar_lea.vmem %s1789_s1, 256  ;;  %s1596_s18 = smov [#allocation5]  }
  0x52   : > { %p1428_p11 = scmp.ne.s32.totalorder %s1789_s1, %s1427_s20  ;;  %s1432_s13 = sshll.u32 %s1596_s18, 4  ;;  %s1433_s13 = int_to_ptr.vmem [resolvable:$false] %s1432_s13 }
  0x53   : > { %s1434_s16 = scalar_lea.vmem %s1433_s13, 512  ;;  %p1435_p12 = scmp.lt.s32.totalorder %s1789_s1, %s1433_s13 }
  0x54   : > { %p1430_p0 = pnand %p1428_p11, %p1714_p9  ;;  %p1436_p1 = scmp.lt.s32.totalorder %s1434_s16, %s1427_s20 }
  0x56   : > { %p1431_p3 = pneg %p1430_p0  ;;  %p1437_p5 = por %p1436_p1, %p1435_p12 }
  0x58   : > { %p1438_p10 = pnand %p1437_p5, %p1431_p3 }
  0x5a   : > { %1441 = shalt.err (!%p1438_p10)
}
  0x5b   : > { %s2059_s26 = smov 8   ;;  %s2060_s8 = smov 128  }
  0x5c   : > { %1297 = dma.hbm_to_vmem [thread:$0]  (!%p1694_p7), %s1780_s29, 256, %s1789_s1, %s1793_s25, %s2060_s8, %s2060_s8, %s2059_s26  }
  0x5d   : > { %s1442_s18 = scalar_lea.hbm %s2017_s4, 512  ;;  %p2061_p3 = scmp.ne.s32.totalorder %s2057_s27, 0 }
  0x5e   : > { %p1443_p4 = scmp.ne.s32.totalorder %s2017_s4, %s1442_s18  ;;  %p1449_p1 = scmp.lt.u32.totalorder %s1442_s18, %s2017_s4 }
  0x5f   : > { %p1444_p6 = pneg %p2061_p3 }
  0x61   : > { %p1445_p8 = pnand %p1444_p6, %p1443_p4 }
  0x63   : > { %p1446_p12 = pneg %p1445_p8 }
  0x65   : > { %p1451_p2 = pnand %p1449_p1, %p1446_p12 }
  0x67   : > { %1454 = shalt.err (!%p1451_p2)
}
  0x68   : > { %s1455_s1 = scalar_lea.vmem %s1772_s28, 512  ;;  %p1463_p5 = scmp.lt.s32.totalorder %s1772_s28, %s1772_s28 }
  0x69   : > { %p1456_p13 = scmp.ne.s32.totalorder %s1772_s28, %s1455_s1  ;;  %p1464_p10 = scmp.lt.s32.totalorder %s1455_s1, %s1455_s1 }
  0x6b   : > { %p1458_p11 = pnand %p1456_p13, %p1444_p6  ;;  %p1465_p7 = por %p1464_p10, %p1463_p5 }
  0x6d   : > { %p1459_p0 = pneg %p1458_p11 }
  0x6f   : > { %p1466_p9 = pnand %p1465_p7, %p1459_p0 }
  0x71   : > { %1469 = shalt.err (!%p1466_p9)
}
  0x72   : > { %1293 = dma.hbm_to_vmem [thread:$0]  (!%p2061_p3), %s2017_s4, 512, %s1772_s28, [#allocation12], %s2060_s8, %s2060_s8, %s2059_s26  }
  0x73   : > { %s1848_s30 = scalar_lea.hbm %s2015_s2, %s1685_s7  ;;  %s311_s27 = scalar_lea.vmem [#allocation10], %s1692_s9 }
  0x74   : > { %s319_s18 = sshll.u32 %s311_s27, 4  ;;  %s1470_s13 = scalar_lea.hbm %s1848_s30, 256  ;;  %s1851_s18 = int_to_ptr.vmem [resolvable:$true] %s319_s18 }
  0x75   : > { %p1471_p7 = scmp.ne.s32.totalorder %s1848_s30, %s1470_s13  ;;  %p2062_p9 = scmp.ne.s32.totalorder %s2049_s19, 0 }
  0x76   : > { %s1475_s16 = scalar_lea.hbm %s2015_s2, 512  ;;  %p1476_p3 = scmp.lt.u32.totalorder %s1848_s30, %s2015_s2 }
  0x77   : > { %p1473_p4 = pnand %p1471_p7, %p2062_p9  ;;  %p1477_p8 = scmp.lt.u32.totalorder %s1475_s16, %s1470_s13 }
  0x78   : > { %p1479_p1 = scmp.lt.u32.totalorder %s1470_s13, %s1848_s30 }
  0x79   : > { %p1474_p6 = pneg %p1473_p4  ;;  %p1478_p12 = por %p1477_p8, %p1476_p3 }
  0x7b   : > { %p1480_p2 = por %p1479_p1, %p1478_p12 }
  0x7d   : > { %p1481_p13 = pnand %p1480_p2, %p1474_p6 }
  0x7f   : > { %1484 = shalt.err (!%p1481_p13)
}
  0x80   : > { %s1485_s9 = scalar_lea.vmem %s1851_s18, 256  ;;  %s1597_s0 = smov [#allocation10]  }
  0x81   : > { %p1486_p11 = scmp.ne.s32.totalorder %s1851_s18, %s1485_s9  ;;  %s1490_s23 = sshll.u32 %s1597_s0, 4  ;;  %s1491_s23 = int_to_ptr.vmem [resolvable:$false] %s1490_s23 }
  0x82   : > { %s1492_s25 = scalar_lea.vmem %s1491_s23, 512  ;;  %p1493_p10 = scmp.lt.s32.totalorder %s1851_s18, %s1491_s23 }
  0x83   : > { %p1488_p0 = pnand %p1486_p11, %p2062_p9  ;;  %p1494_p7 = scmp.lt.s32.totalorder %s1492_s25, %s1485_s9 }
  0x85   : > { %p1489_p5 = pneg %p1488_p0  ;;  %p1495_p4 = por %p1494_p7, %p1493_p10 }
  0x87   : > { %p1496_p3 = pnand %p1495_p4, %p1489_p5 }
  0x89   : > { %1499 = shalt.err (!%p1496_p3)
}
  0x8a   : > { %p2063_p6 = scmp.ne.s32.totalorder %s2047_s10, 0  ;;  %p2064_p9 = scmp.ne.s32.totalorder %s2055_s15, 0 }
  0x8b   : > { %s1881_s19 = sand.u32 (!%p2064_p9), 1, %s1574_s22   ;;  %p2065_p8 = scmp.ne.s32.totalorder (!%p2064_p9), %s2050_s11, 0 }
  0x8c   : > { %1303 = dma.hbm_to_vmem [thread:$0]  (!%p2063_p6), %s1848_s30, 256, %s1851_s18, %s1708_s17, %s2060_s8, %s2060_s8, %s2059_s26  }
  0x8d   : > { %344 = sbr.rel (%p2064_p9) target bundleno = 1193 (0x4a9), region = 44  ;;  %s1884_s29 = sshll.u32 (!%p2064_p9), %s1881_s19, 4 }
  0x8e   : > { %s347_s10 = scalar_lea.sflag (!%p2064_p9), [#allocation6], %s1881_s19  ;;  %s350_s27 = scalar_lea.vmem (!%p2064_p9), [#allocation5], %s1884_s29 }
  0x94   : > { %1553 = dma.done.wait (%p2065_p8), %s347_s10, 256  }
  0x95   : > { %1555 = vsyncadd (%p2065_p8), %s347_s10, 4294967040  ;;  %s355_s17 = sand.u32 1, %s1742_s12   ;;  %s359_s26 = scalar_lea.vmem [#allocation8], %s1884_s29 }
  0x96   : > { %s356_s15 = scalar_lea.sflag [#allocation9], %s355_s17 }
  0x97   : > { %1557 = dma.done.wait (%p2065_p8), %s356_s15, 512  }
  0x98   : > { %1559 = vsyncadd (%p2065_p8), %s356_s15, 4294966784  ;;  %s368_s8 = scalar_lea.vmem [#allocation10], %s1884_s29  ;;  %p2066_p12 = scmp.eq.s32.totalorder %s1742_s12, 0 }
  0x9a   : > { %1561 = dma.done.wait (%p2066_p12), [#allocation12], 512   ;;  %p2067_p1 = pmov %p2066_p12 }
  0x9b   : > { %vm440_vm0 = vcmask 130048   ;;  %v1598_v0 = vmov 0.0   ;;  %vm1599_vm1 = vmmov 0   ;;  %v446_v1 = vld [vmem:[%s359_s26] sm:$0xff]  ;;  %v1206_v2 = vld [vmem:[%s359_s26 + $0x8] sm:$0xff]  ;;  %vm435_vm2 = vcmask 7168  }
  0x9c   : > { %1563 = vsyncadd (%p2067_p1), [#allocation12], 4294966784  ;;  %1235 = vmatprep.subr.mxu0 %v1598_v0  ;;  %441 = vst.msk [vmem:[#allocation4] sm:$0xff] %vm440_vm0, %v1598_v0  ;;  %1237 = vmatprep.mubr.msk.f32.mxu0 %vm1599_vm1, %v1598_v0  ;;  %v445_v3 = vld [vmem:[%s350_s27] sm:$0xff]  ;;  %v1205_v4 = vld [vmem:[%s350_s27 + $0x8] sm:$0xff]  ;;  %v1600_v5 = vmov -inf  }
  0x9d   : > { %442 = vst.msk [vmem:[#allocation4 + $0x8] sm:$0xff] %vm440_vm0, %v1598_v0  ;;  %1245 = vmatprep.subr.mxu1 %v1598_v0  ;;  %1247 = vmatprep.mubr.msk.f32.mxu1 %vm1599_vm1, %v1598_v0  ;;  %p421_p2 = scmp.lt.s32.totalorder %s1582_s24, 1  ;;  %vm526_vm3 = vcmask 64512   ;;  %v1601_v16 = vmov 0   ;;  %v447_v25 = vld [vmem:[%s368_s8] sm:$0xff]  ;;  %v1207_v32 = vld [vmem:[%s368_s8 + $0x8] sm:$0xff] }
  0x9e   : > { %1236 = vmatpush3.xpose.msk.msra.mxu0 %vm440_vm0, %v446_v1  ;;  %1246 = vmatpush3.xpose.msk.msra.mxu1 %vm440_vm0, %v1206_v2  ;;  %436 = vst.msk [vmem:[#allocation2] sm:$0xff] %vm435_vm2, %v1600_v5  ;;  %437 = vst.msk [vmem:[#allocation2 + $0x8] sm:$0xff] %vm435_vm2, %v1600_v5  ;;  %v839_v41 = vld [vmem:[#allocation11] sm:$0xff]  ;;  %v840_v42 = vld [vmem:[#allocation11 + $0x8] sm:$0xff]  ;;  %v1602_v43 = vmov 0.0|0.0   ;;  %s1200_s20 = sshll.u32 %s1881_s19, 3 }
  0x9f   : > { %1240 = vmatprep.subr.mxu0 %v1598_v0  ;;  %438 = vst.msk [vmem:[#allocation3] sm:$0xff] %vm435_vm2, %v1598_v0  ;;  %439 = vst.msk [vmem:[#allocation3 + $0x8] sm:$0xff] %vm435_vm2, %v1598_v0  ;;  %s422_s12 = scalar_select %p421_p2, %s1582_s24, 1  ;;  %1368 = vset.pattern.permute.xlu1 %v1601_v16  ;;  %v1270_v44 = vpack.c.bf16 %v840_v42, %v839_v41  ;;  %vm1005_vm4 = vcmask 261120  }
  0xa0   : > { %1369 = vset.pattern.permute.xlu0 %v1601_v16  ;;  %1269 = vmatprep.subr.bf16.mxu1 %v1602_v43  ;;  %s1215_s1 = sshll.u32 %s1582_s24, 7  ;;  %s420_s7 = scalar_lea.vmem [#allocation13], %s1200_s20 }
  0xa1   : > { %1238 = vmatmul.mubr.msk.f32.vlgmr.msra.gmra.mrb[0].mxu0 %vm440_vm0, %v445_v3  ;;  %1248 = vmatmul.mubr.msk.f32.vlgmr.msra.gmra.mrb[0].mxu1 %vm440_vm0, %v1205_v4  ;;  %s1201_s11 = sshll.u32 %s422_s12, 2  ;;  %s1022_s9 = sshll.u32 %s420_s7, 4  ;;  %s1966_s9 = int_to_ptr.vmem [resolvable:$true] %s1022_s9 }
  0xa2   : > { %1242 = vmatprep.mubr.msk.f32.mxu0 %vm1599_vm1, %v1598_v0  ;;  %1259 = vmatprep.mubr.msk.f32.mxu1 %vm1599_vm1, %v1598_v0  ;;  %s430_s13 = scalar_lea.vmem %s2016_s3, %s1201_s11  ;;  %s1964_s25 = scalar_lea.hbm %s2019_s6, %s1215_s1 }
  0xa3   : > { %v443_v6 = vld [vmem:[%s430_s13] sm:$0xf]  ;;  %1241 = vmatpush3.msra.mxu0 %v447_v25  ;;  %1271 = vmatpush3.bf16.msra.mxu1 %v1270_v44  ;;  %s1008_s29 = scalar_lea.sflag [#allocation7], %s1881_s19  ;;  %s1500_s10 = scalar_lea.vmem %s1966_s9, 128 }
  0xa4   : > { %v444_v7 = vunpack.c.l.bf16 %v443_v6  ;;  %1250 = vmatprep.subr.mxu0 %v1598_v0  ;;  %1272 = vmatprep.subr.bf16.mxu1 %v1602_v43  ;;  %v550_v57 = vld [vmem:[#allocation4] sm:$0xff]  ;;  %v741_v60 = vld [vmem:[#allocation4 + $0x8] sm:$0xff]  ;;  %p1501_p13 = scmp.ne.s32.totalorder %s1966_s9, %s1500_s10  ;;  %p2068_p11 = scmp.ne.s32.totalorder %s2052_s14, 0 }
  0xa5   : > { %v525_v17 = vld [vmem:[#allocation2] sm:$0xff]  ;;  %v716_v20 = vld [vmem:[#allocation2 + $0x8] sm:$0xff]  ;;  %s1603_s24 = smov [#allocation13]  }
  0xa6   : > { %v542_v45 = vld [vmem:[#allocation3] sm:$0xff]  ;;  %v733_v48 = vld [vmem:[#allocation3 + $0x8] sm:$0xff]  ;;  %v929_v6 = vld [vmem:[#allocation11 + $0x10] sm:$0xff]  ;;  %p1502_p0 = pnand %p1501_p13, %p2068_p11  ;;  %s1504_s27 = sshll.u32 %s1603_s24, 4  ;;  %s1505_s27 = int_to_ptr.vmem [resolvable:$false] %s1504_s27 }
  0xa7   : > { %s1506_s17 = scalar_lea.vmem %s1505_s27, 256  ;;  %p1507_p10 = scmp.lt.s32.totalorder %s1966_s9, %s1505_s27 }
  0xa8   : > { %p1503_p5 = pneg %p1502_p0  ;;  %p1508_p7 = scmp.lt.s32.totalorder %s1506_s17, %s1500_s10 }
  0xaa   : > { %p1509_p4 = por %p1508_p7, %p1507_p10 }
  0xac   : > { %p1510_p3 = pnand %p1509_p4, %p1503_p5 }
 0x174   : > { %v521_v8 = vpop.f32.mrb[0].mxu0  ;;  %v711_v9 = vpop.f32.mrb[0].mxu1 }
 0x175   : > { %v522_v10 = vadd.f32 %v521_v8, %v444_v7  ;;  %v1239_v11 = vpop.f32.mrb[1].mxu0  ;;  %v712_v12 = vadd.f32 %v711_v9, %v444_v7  ;;  %v1249_v13 = vpop.f32.mrb[1].mxu1  ;;  %v930_v7 = vld [vmem:[#allocation11 + $0x18] sm:$0xff] }
 0x177   : > { %v527_v14 = vsel %vm526_vm3, %v522_v10, -inf  ;;  %v717_v15 = vsel %vm526_vm3, %v712_v12, -inf }
 0x178   : > { %528 = vmax.xlane.f32.xlu0 %v527_v14 }
 0x17c   : > { %718 = vmax.xlane.f32.xlu0 %v717_v15  ;;  %v1212_v15 = vld [vmem:[%s2018_s5] ss:$0 sm:$0xff] }
 0x205   : > { %v529_v18 = vpop.xlane.xlu0 %528 }
 0x206   : > { %v530_v19 = vmax.f32 %v525_v17, %v529_v18 }
 0x208   : > { %v531_v21 = vsub.f32 %v525_v17, %v530_v19  ;;  %632 = vst.msk [vmem:[#allocation2] sm:$0xff] %vm435_vm2, %v530_v19  ;;  %536 = vperm.xlu1 %1368, %v530_v19  }
 0x209   : > { %v719_v22 = vpop.xlane.xlu0 %718 }
 0x20a   : > { %v720_v23 = vmax.f32 %v716_v20, %v719_v22  ;;  %v532_v38 = vmul.f32 1.442695, %v531_v21 }
 0x20c   : > { %v721_v24 = vsub.f32 %v716_v20, %v720_v23  ;;  %823 = vst.msk [vmem:[#allocation2 + $0x8] sm:$0xff] %vm435_vm2, %v720_v23  ;;  %726 = vperm.xlu1 %1368, %v720_v23  }
 0x20e   : > { %v722_v37 = vmul.f32 1.442695, %v721_v24 }
 0x287   : > { %v537_v26 = vpop.permute.xlu1 %536 }
 0x288   : > { %v539_v27 = vsub.f32 %v522_v10, %v537_v26  ;;  %v1273_v10 = vpack.c.bf16 %v930_v7, %v929_v6 }
 0x28a   : > { %v540_v28 = vmul.f32 1.442695, %v539_v27 }
 0x28b   : > { %v727_v29 = vpop.permute.xlu1 %726 }
 0x28c   : > { %1370 = vpow2.f32 %v540_v28  ;;  %v729_v30 = vsub.f32 %v712_v12, %v727_v29 }
 0x28e   : > { %v730_v31 = vmul.f32 1.442695, %v729_v30 }
 0x290   : > { %1372 = vpow2.f32 %v730_v31 }
 0x291   : > { %1374 = vpow2.f32 %v722_v37 }
 0x292   : > { %1376 = vpow2.f32 %v532_v38 }
 0x296   : > { %v1371_v33 = vpop.eup %1370 }
 0x297   : > { %1243 = vmatmul.mubr.msk.f32.vlgmr.msra.gmra.mrb[2].mxu0 %vm526_vm3, %v1371_v33  ;;  %v544_v34 = vsel %vm526_vm3, %v1371_v33, 0.0 }
 0x298   : > { %545 = vadd.xlane.f32.xlu0 %v544_v34  ;;  %1251 = vmatpush3.msra.mxu0 %v1207_v32 }
 0x299   : > { %1252 = vmatprep.mubr.msk.f32.mxu0 %vm1599_vm1, %v1598_v0 }
 0x29a   : > { %v1373_v35 = vpop.eup %1372 }
 0x29b   : > { %1253 = vmatmul.mubr.msk.f32.vlgmr.msra.gmra.mrb[4].mxu0 %vm526_vm3, %v1373_v35  ;;  %v735_v36 = vsel %vm526_vm3, %v1373_v35, 0.0  ;;  %v1375_v39 = vpop.eup %1374 }
 0x29c   : > { %736 = vadd.xlane.f32.xlu1 %v735_v36  ;;  %v1377_v40 = vpop.eup %1376  ;;  %v734_v50 = vmul.f32 %v1375_v39, %v733_v48 }
 0x29d   : > { %v543_v46 = vmul.f32 %v1377_v40, %v542_v45 }
 0x2ad   : > { %744 = vperm.xlu1 %1368, %v1375_v39  }
 0x2ae   : > { %553 = vperm.xlu0 %1369, %v1377_v40  }
 0x325   : > { %v546_v47 = vpop.xlane.xlu0 %545 }
 0x326   : > { %v547_v49 = vadd.f32 %v546_v47, %v543_v46 }
 0x328   : > { %549 = vst.msk [vmem:[#allocation3] sm:$0xff] %vm435_vm2, %v547_v49 }
 0x329   : > { %v737_v51 = vpop.xlane.xlu1 %736 }
 0x32a   : > { %v738_v52 = vadd.f32 %v737_v51, %v734_v50 }
 0x32c   : > { %739 = vst.msk [vmem:[#allocation3 + $0x8] sm:$0xff] %vm435_vm2, %v738_v52 }
 0x32d   : > { %v554_v58 = vpop.permute.xlu0 %553  ;;  %v745_v61 = vpop.permute.xlu1 %744 }
 0x32e   : > { %v556_v59 = vmul.f32 %v554_v58, %v550_v57  ;;  %v747_v2 = vmul.f32 %v745_v61, %v741_v60 }
 0x32f   : > { %v827_v53 = vld [vmem:[#allocation3] sm:$0xff] }
 0x330   : > { %1378 = vrcp.f32 %v827_v53 }
 0x333   : > { %v828_v54 = vld [vmem:[#allocation3 + $0x8] sm:$0xff] }
 0x334   : > { %1380 = vrcp.f32 %v828_v54 }
 0x33a   : > { %v1379_v55 = vpop.eup %1378 }
 0x33b   : > { %835 = vperm.xlu0 %1369, %v1379_v55  }
 0x33e   : > { %v1381_v56 = vpop.eup %1380 }
 0x33f   : > { %924 = vperm.xlu0 %1369, %v1381_v56  }
 0x36a   : > { %v626_v62 = vpop.f32.mrb[2].mxu0 }
 0x36b   : > { %v630_v63 = vadd.f32 %v626_v62, %v556_v59  ;;  %v1244_v1 = vpop.f32.mrb[3].mxu0 }
 0x36d   : > { %631 = vst.msk [vmem:[#allocation4] sm:$0xff] %vm440_vm0, %v630_v63 }
 0x36e   : > { %v817_v3 = vpop.f32.mrb[4].mxu0 }
 0x36f   : > { %v821_v4 = vadd.f32 %v817_v3, %v747_v2  ;;  %v1254_v5 = vpop.f32.mrb[5].mxu0 }
 0x371   : > { %822 = vst.msk [vmem:[#allocation4 + $0x8] sm:$0xff] %vm440_vm0, %v821_v4 }
 0x374   : > { %v832_v8 = vld [vmem:[#allocation4] sm:$0xff] }
 0x378   : > { %v921_v13 = vld [vmem:[#allocation4 + $0x8] sm:$0xff] }
 0x3ba   : > { %v836_v9 = vpop.permute.xlu0 %835 }
 0x3bb   : > { %v838_v11 = vmul.f32 %v836_v9, %v832_v8 }
 0x3bd   : > { %1260 = vmatmul.mubr.msk.f32.vlgmr.msra.gmra.mrb[2].mxu1 %vm440_vm0, %v838_v11 }
 0x3be   : > { %1274 = vmatpush3.bf16.msra.mxu1 %v1273_v10  ;;  %1266 = vmatprep.mubr.msk.f32.mxu1 %vm1599_vm1, %v1598_v0  ;;  %v925_v12 = vpop.permute.xlu0 %924 }
 0x3bf   : > { %v927_v14 = vmul.f32 %v925_v12, %v921_v13 }
 0x3c5   : > { %1267 = vmatmul.mubr.msk.f32.vlgmr.msra.gmra.mrb[2].mxu1 %vm440_vm0, %v927_v14 }
 0x498   : > { %v1000_v16 = vpop.f32.mrb[2].mxu1 }
 0x499   : > { %v1275_v17 = vadd.f32 %v1212_v15, %v1000_v16  ;;  %v1268_v18 = vpop.f32.mrb[3].mxu1 }
 0x49b   : > { %1006 = vst.msk [vmem:[%s420_s7] sm:$0xff] %vm1005_vm4, %v1275_v17 }
 0x49c   : > { %1513 = shalt.err (!%p1510_p3)
}
 0x49d   : > { %s1514_s19 = scalar_lea.hbm %s1964_s25, 128  ;;  %s1518_s8 = scalar_lea.hbm %s2019_s6, 256 }
 0x49e   : > { %p1515_p6 = scmp.ne.s32.totalorder %s1964_s25, %s1514_s19  ;;  %p1519_p12 = scmp.lt.u32.totalorder %s1964_s25, %s2019_s6 }
 0x49f   : > { %p1520_p1 = scmp.lt.u32.totalorder %s1518_s8, %s1514_s19  ;;  %p1522_p13 = scmp.lt.u32.totalorder %s1514_s19, %s1964_s25 }
 0x4a0   : > { %p1516_p9 = pnand %p1515_p6, %p2068_p11 }
 0x4a1   : > { %p1521_p2 = por %p1520_p1, %p1519_p12 }
 0x4a2   : > { %p1517_p8 = pneg %p1516_p9 }
 0x4a3   : > { %p1523_p0 = por %p1522_p13, %p1521_p2 }
 0x4a5   : > { %p1524_p5 = pnand %p1523_p0, %p1517_p8 }
 0x4a7   : > { %1527 = shalt.err (!%p1524_p5)
}
 0x4a8   : > { %1288 = dma.vmem_to_hbm [thread:$0]  (%p2068_p11), %s1966_s9, 128, %s1964_s25, %s1008_s29  }
 0x4a9 PF: > { %s2069_s30 = sld [smem:[#allocation23_spill]]  ;;  %s2070_s18 = sld [smem:[#allocation20_spill]] }
 0x4aa   : > { %s1034_s13 = sand.u32 1, %s1570_s21  }
 0x4ab   : > { %s1035_s20 = scalar_lea.sflag [#allocation7], %s1034_s13 }
 0x4af   : > { %p2071_p10 = scmp.ne.s32.totalorder %s2069_s30, 0  ;;  %p2072_p7 = scmp.ge.s32.totalorder %s2070_s18, 2 }
 0x4b1   : > { %p1305_p4 = pnand %p2072_p7, %p2071_p10 }
 0x4b3   : > { %1565 = dma.done.wait (!%p1305_p4), %s1035_s20, 128  }
 0x4b4   : > { %1567 = vsyncadd (!%p1305_p4), %s1035_s20, 4294967168  ;;  %s26_s26 = sadd.s32 1, %s2070_s18   ;;  %s2073_s28 = sld [smem:[#allocation18_spill]] }
 0x4b5   : > { %p23_p3 = scmp.ge.s32.totalorder %s26_s26, 4   ;;  %s2074_s23 = sld [smem:[#allocation22_spill]] }
 0x4b6   : > { %s2075_s24 = sld [smem:[#allocation19_spill]]  ;;  %s2076_s25 = sld [smem:[#allocation21_spill]] }
 0x4b7   : > { %s2077_s21 = smov %s1574_s22  ;;  %25 = sbr.rel (!%p23_p3) target bundleno = 12 (0xc), region = 135 }
 0x4ba   : > { %s2078_s22 = smov %s2073_s28 }
 0x4be   :  { %1040 = vsyncpa [#allocation6], 1 }
 0x4bf   :  { %1042 = vsyncpa [#allocation6 + $0x1], 1 }
 0x4c0   :  { %1043 = vsyncpa [#allocation9], 1 }
 0x4c1   :  { %1045 = vsyncpa [#allocation9 + $0x1], 1 }
 0x4c2   :  { %1046 = vsyncpa [#allocation12], 1 }
 0x4c3   :  { %1047 = vsyncpa [#allocation7], 1 }
 0x4c4   :  { %1049 = vsyncpa [#allocation7 + $0x1], 1 }

</bundles_post_ra>
